<compile_context>
chip_gen: v5e
topology: v5e:2x2
jax: 0.10.0
libtpu: 0.0.40
codegen_flags: <defaults>
</compile_context>

<pallas_src>
import jax
import jax.numpy as jnp
from jax.experimental import pallas as pl
from jax.experimental.pallas import tpu as pltpu

D_IN = 512
N_CLS = 25


def avvp_kernel(a_ref, v_ref, w_ref, b_ref, probs_ref, fp_ref):
    TB, T, D = a_ref.shape
    M = TB * T

    w = w_ref[...]                                  # [512, 75], resident
    b = b_ref[...]                                  # [1, 75]

    def heads(x_ref):
        # One fused [M, 512] @ [512, 75] MXU pass for all three heads.
        # NOTE: operands kept f32 (v5e has no bf16 VPU/EUP and the reference
        # tolerance is tight); bf16 inputs would halve HBM traffic / MXU
        # passes on v6e/v7x if looser numerics are acceptable.
        x = x_ref[...].reshape(M, D)
        y = jnp.dot(x, w, preferred_element_type=jnp.float32) + b
        y = y.reshape(TB, T, 3 * N_CLS)
        prob = jax.nn.sigmoid(y[..., 0:N_CLS])                 # fc_prob
        lf = y[..., N_CLS:2 * N_CLS]                           # fc_frame_att
        lg = y[..., 2 * N_CLS:3 * N_CLS]                       # fc_av_att
        return prob, lf, lg

    prob_a, lf_a, lg_a = heads(a_ref)
    prob_v, lf_v, lg_v = heads(v_ref)

    # frame_att = softmax over the time axis (torch dim=1), per modality/class.
    fa_a = jax.nn.softmax(lf_a, axis=1)
    fa_v = jax.nn.softmax(lf_v, axis=1)

    # av_att = softmax over the modality axis of size 2 (torch dim=2).
    m = jnp.maximum(lg_a, lg_v)
    ea = jnp.exp(lg_a - m)
    ev = jnp.exp(lg_v - m)
    inv_den = pl.reciprocal(ea + ev, approx=True)   # EUP slot, ~free
    av_a = ea * inv_den
    av_v = ev * inv_den

    # temporal_prob and the reductions (all per-batch-element).
    ta = fa_a * prob_a
    tv = fa_v * prob_v

    probs_ref[0] = jnp.sum(ta * av_a + tv * av_v, axis=1)   # global_prob [TB,25]
    probs_ref[1] = jnp.sum(ta, axis=1)                      # a_prob      [TB,25]
    probs_ref[2] = jnp.sum(tv, axis=1)                      # v_prob      [TB,25]

    # frame_prob as [TB, T, 50]: audio in lanes 0:25, video in lanes 25:50.
    fp_ref[:, :, 0:N_CLS] = prob_a
    fp_ref[:, :, N_CLS:2 * N_CLS] = prob_v


def _batch_tile(B, T, requested=None, target_rows=1024):
    """Batch elements per grid step.

    Defaults to ~1024 activation rows (TB*T) per modality per step: amortizes
    per-step overhead on this HBM-bound kernel while keeping the
    double-buffered input blocks (~8 MiB total for T~8-10) far below even the
    v7x 64 MiB VMEM. When B is large enough, keep >= 2 grid steps so the
    "parallel" batch axis can shard across both v7x TensorCores / megacore.
    """
    if requested is not None:
        tb = max(1, min(requested, B))
    else:
        tb = max(1, min(B, target_rows // max(T, 1)))
        if tb >= B and B > 1:
            tb = pl.cdiv(B, 2)          # keep two grid steps for 2-TC sharding
    if tb < B and tb % 8 != 0:
        # The (3, TB, 25) output block puts TB in the sublane position, so it
        # must be a multiple of 8 unless it spans the whole batch.
        tb = min(B, max(8, (tb // 8) * 8))
    return tb


def avvp_head(a_out, v_out, params, *, batch_tile=None):
    """Pallas implementation of AVVPHead.forward."""
    B, T, D = a_out.shape
    assert D == D_IN
    wp, bp, wf, bf, wa, ba = params

    # Fuse the three 512x25 heads into a single [512, 75] weight / [1, 75]
    # bias: one weight DMA stream and ~3x fewer MXU K-passes.
    w_fused = jnp.concatenate([wp, wf, wa], axis=1)
    b_fused = jnp.concatenate([bp, bf, ba], axis=1)

    tb = _batch_tile(B, T, batch_tile)
    grid = (pl.cdiv(B, tb),)

    feat_spec = pl.BlockSpec((tb, T, D_IN), lambda i: (i, 0, 0))
    w_spec = pl.BlockSpec((D_IN, 3 * N_CLS), lambda i: (0, 0))
    b_spec = pl.BlockSpec((1, 3 * N_CLS), lambda i: (0, 0))

    out_shapes = (
        jax.ShapeDtypeStruct((3, B, N_CLS), jnp.float32),      # [global, a, v]
        jax.ShapeDtypeStruct((B, T, 2 * N_CLS), jnp.float32),  # frame_prob lanes
    )
    out_specs = (
        pl.BlockSpec((3, tb, N_CLS), lambda i: (0, i, 0)),
        pl.BlockSpec((tb, T, 2 * N_CLS), lambda i: (i, 0, 0)),
    )

    probs, fp = pl.pallas_call(
        avvp_kernel,
        out_shape=out_shapes,
        grid=grid,
        in_specs=[feat_spec, feat_spec, w_spec, b_spec],
        out_specs=out_specs,
        compiler_params=pltpu.CompilerParams(
            dimension_semantics=("parallel",),
            # Headroom for larger batch tiles; actual usage (~10-15 MiB at the
            # default tile) stays well below the v7x 64 MiB physical VMEM.
            vmem_limit_bytes=64 << 20),
    )(a_out, v_out, w_fused, b_fused)

    return {
        "global_prob": probs[0],
        "a_prob": probs[1],
        "v_prob": probs[2],
        # Lane-split reshape only (no transpose / HBM round-trip); modality
        # index 0 = audio, 1 = video (torch.cat order).
        "frame_prob": fp.reshape(B, T, 2, N_CLS),
    }


def avvp_head_ref(a_out, v_out, params):
    """Pure-JAX reference mirroring the PyTorch forward exactly."""
    wp, bp, wf, bf, wa, ba = params
    x = jnp.concatenate([a_out[:, :, None, :], v_out[:, :, None, :]], axis=2)
    frame_prob = jax.nn.sigmoid(x @ wp + bp[0])
    frame_att = jax.nn.softmax(x @ wf + bf[0], axis=1)
    av_att = jax.nn.softmax(x @ wa + ba[0], axis=2)
    temporal_prob = frame_att * frame_prob
    global_prob = (temporal_prob * av_att).sum(axis=2).sum(axis=1)
    a_prob = temporal_prob[:, :, 0, :].sum(axis=1)
    v_prob = temporal_prob[:, :, 1, :].sum(axis=1)
    return {"global_prob": global_prob, "a_prob": a_prob,
            "v_prob": v_prob, "frame_prob": frame_prob}


def init_params(key):
    """Deterministic synthetic init (same shapes as the nn.Linear(512, 25) layers)."""
    ks = jax.random.split(key, 6)
    bound = 1.0 / (D_IN ** 0.5)

    def w(k):  # stored transposed: [512, 25]
        return jax.random.uniform(k, (D_IN, N_CLS), jnp.float32, -bound, bound)

    def b(k):  # stored as [1, 25]
        return jax.random.uniform(k, (1, N_CLS), jnp.float32, -bound, bound)

    return (w(ks[0]), b(ks[1]), w(ks[2]), b(ks[3]), w(ks[4]), b(ks[5]))


if __name__ == "__main__":
    key = jax.random.PRNGKey(0)
    k_a, k_b, k_c, k_p = jax.random.split(key, 4)
    params = init_params(k_p)

    # global_prob goes through the approximate EUP reciprocal -> looser
    # tolerance; all other outputs stay on the exact path.
    tols = {"global_prob": 2e-2, "a_prob": 1e-5, "v_prob": 1e-5,
            "frame_prob": 1e-5}

    def run_case(B, T, batch_tile, k):
        ka, kv = jax.random.split(k)
        a_out = jax.random.normal(ka, (B, T, D_IN), jnp.float32)
        v_out = jax.random.normal(kv, (B, T, D_IN), jnp.float32)
        out = avvp_head(a_out, v_out, params, batch_tile=batch_tile)
        out = jax.tree_util.tree_map(jax.block_until_ready, out)
        ref = avvp_head_ref(a_out, v_out, params)
        for name, tol in tols.items():
            assert out[name].shape == ref[name].shape, (name, out[name].shape)
            assert jnp.allclose(out[name], ref[name], atol=tol, rtol=tol), name

    run_case(2, 8, None, k_a)    # tiny demo: one grid step covers the batch
    run_case(16, 8, None, k_c)   # auto tile: 2 steps of 8 (2-TC friendly)
    run_case(24, 8, 8, k_b)      # explicit tile: 3 steps of 8 batch elements

    print("KERNEL_OK")
</pallas_src>

<mosaic_0001>
module attributes {stable_mosaic.version = 11 : i64} {
  func.func @avvp_kernel(%arg0: i32, %arg1: memref<2x8x512xf32, #tpu.memory_space<vmem>>, %arg2: memref<2x8x512xf32, #tpu.memory_space<vmem>>, %arg3: memref<512x75xf32, #tpu.memory_space<vmem>>, %arg4: memref<1x75xf32, #tpu.memory_space<vmem>>, %arg5: memref<3x2x25xf32, #tpu.memory_space<vmem>>, %arg6: memref<2x8x50xf32, #tpu.memory_space<vmem>>) attributes {dimension_semantics = [#tpu.dimension_semantics<parallel>], iteration_bounds = array<i64: 1>, scalar_prefetch = 0 : i64, scratch_operands = 0 : i64, tpu.core_type = #tpu.core_type<tc>, window_params = [{transform_indices = @transform_0, window_bounds = array<i64: 2, 8, 512>}, {transform_indices = @transform_1, window_bounds = array<i64: 2, 8, 512>}, {pipeline_mode = #tpu.pipeline_mode<synchronous>, transform_indices = @transform_2, window_bounds = array<i64: 512, 75>}, {pipeline_mode = #tpu.pipeline_mode<synchronous>, transform_indices = @transform_3, window_bounds = array<i64: 1, 75>}, {transform_indices = @transform_4, window_bounds = array<i64: 3, 2, 25>}, {transform_indices = @transform_5, window_bounds = array<i64: 2, 8, 50>}]} {
    %c0 = arith.constant 0 : index
    %c0_0 = arith.constant 0 : index
    %0 = vector.load %arg3[%c0, %c0_0] : memref<512x75xf32, #tpu.memory_space<vmem>>, vector<512x75xf32>
    %c0_1 = arith.constant 0 : index
    %c0_2 = arith.constant 0 : index
    %1 = vector.load %arg4[%c0_1, %c0_2] : memref<1x75xf32, #tpu.memory_space<vmem>>, vector<1x75xf32>
    %c0_3 = arith.constant 0 : index
    %c0_4 = arith.constant 0 : index
    %c0_5 = arith.constant 0 : index
    %2 = vector.load %arg1[%c0_3, %c0_4, %c0_5] : memref<2x8x512xf32, #tpu.memory_space<vmem>>, vector<2x8x512xf32>
    %3 = vector.shape_cast %2 : vector<2x8x512xf32> to vector<16x512xf32>
    %cst = arith.constant dense<0.000000e+00> : vector<16x75xf32>
    %4 = tpu.matmul %3, %0, %cst {dimension_numbers = #tpu.dot_dimension_numbers<[1], [0], [0], [1], [0, 0, 1, 1], [], []>} : vector<16x512xf32>, vector<512x75xf32>, vector<16x75xf32> -> vector<16x75xf32>
    %5 = vector.broadcast %1 : vector<1x75xf32> to vector<16x75xf32>
    %6 = arith.addf %4, %5 : vector<16x75xf32>
    %7 = vector.shape_cast %6 : vector<16x75xf32> to vector<2x8x75xf32>
    %8 = vector.extract_strided_slice %7 {offsets = [0, 0, 0], sizes = [2, 8, 25], strides = [1, 1, 1]} : vector<2x8x75xf32> to vector<2x8x25xf32>
    %9 = arith.negf %8 : vector<2x8x25xf32>
    %10 = math.exp %9 : vector<2x8x25xf32>
    %cst_6 = arith.constant 1.000000e+00 : f32
    %11 = vector.broadcast %cst_6 : f32 to vector<2x8x25xf32>
    %12 = arith.addf %11, %10 : vector<2x8x25xf32>
    %13 = arith.divf %11, %12 : vector<2x8x25xf32>
    %14 = vector.extract_strided_slice %7 {offsets = [0, 0, 25], sizes = [2, 8, 25], strides = [1, 1, 1]} : vector<2x8x75xf32> to vector<2x8x25xf32>
    %15 = vector.extract_strided_slice %7 {offsets = [0, 0, 50], sizes = [2, 8, 25], strides = [1, 1, 1]} : vector<2x8x75xf32> to vector<2x8x25xf32>
    %c0_7 = arith.constant 0 : index
    %c0_8 = arith.constant 0 : index
    %c0_9 = arith.constant 0 : index
    %16 = vector.load %arg2[%c0_7, %c0_8, %c0_9] : memref<2x8x512xf32, #tpu.memory_space<vmem>>, vector<2x8x512xf32>
    %17 = vector.shape_cast %16 : vector<2x8x512xf32> to vector<16x512xf32>
    %cst_10 = arith.constant dense<0.000000e+00> : vector<16x75xf32>
    %18 = tpu.matmul %17, %0, %cst_10 {dimension_numbers = #tpu.dot_dimension_numbers<[1], [0], [0], [1], [0, 0, 1, 1], [], []>} : vector<16x512xf32>, vector<512x75xf32>, vector<16x75xf32> -> vector<16x75xf32>
    %19 = vector.broadcast %1 : vector<1x75xf32> to vector<16x75xf32>
    %20 = arith.addf %18, %19 : vector<16x75xf32>
    %21 = vector.shape_cast %20 : vector<16x75xf32> to vector<2x8x75xf32>
    %22 = vector.extract_strided_slice %21 {offsets = [0, 0, 0], sizes = [2, 8, 25], strides = [1, 1, 1]} : vector<2x8x75xf32> to vector<2x8x25xf32>
    %23 = arith.negf %22 : vector<2x8x25xf32>
    %24 = math.exp %23 : vector<2x8x25xf32>
    %cst_11 = arith.constant 1.000000e+00 : f32
    %25 = vector.broadcast %cst_11 : f32 to vector<2x8x25xf32>
    %26 = arith.addf %25, %24 : vector<2x8x25xf32>
    %27 = arith.divf %25, %26 : vector<2x8x25xf32>
    %28 = vector.extract_strided_slice %21 {offsets = [0, 0, 25], sizes = [2, 8, 25], strides = [1, 1, 1]} : vector<2x8x75xf32> to vector<2x8x25xf32>
    %29 = vector.extract_strided_slice %21 {offsets = [0, 0, 50], sizes = [2, 8, 25], strides = [1, 1, 1]} : vector<2x8x75xf32> to vector<2x8x25xf32>
    %cst_12 = arith.constant dense<0xFF800000> : vector<2x25xf32>
    %30 = vector.multi_reduction <maximumf>, %14, %cst_12 [1] : vector<2x8x25xf32> to vector<2x25xf32>
    %cst_13 = arith.constant 0xFF800000 : f32
    %31 = vector.broadcast %cst_13 : f32 to vector<2x25xf32>
    %32 = arith.maximumf %31, %30 : vector<2x25xf32>
    %33 = vector.shape_cast %32 : vector<2x25xf32> to vector<2x1x25xf32>
    %34 = vector.broadcast %33 : vector<2x1x25xf32> to vector<2x8x25xf32>
    %35 = arith.subf %14, %34 : vector<2x8x25xf32>
    %36 = math.exp %35 : vector<2x8x25xf32>
    %cst_14 = arith.constant dense<0.000000e+00> : vector<2x25xf32>
    %37 = vector.multi_reduction <add>, %36, %cst_14 [1] : vector<2x8x25xf32> to vector<2x25xf32>
    %38 = vector.shape_cast %37 : vector<2x25xf32> to vector<2x1x25xf32>
    %39 = vector.broadcast %38 : vector<2x1x25xf32> to vector<2x8x25xf32>
    %40 = arith.divf %36, %39 : vector<2x8x25xf32>
    %cst_15 = arith.constant dense<0xFF800000> : vector<2x25xf32>
    %41 = vector.multi_reduction <maximumf>, %28, %cst_15 [1] : vector<2x8x25xf32> to vector<2x25xf32>
    %cst_16 = arith.constant 0xFF800000 : f32
    %42 = vector.broadcast %cst_16 : f32 to vector<2x25xf32>
    %43 = arith.maximumf %42, %41 : vector<2x25xf32>
    %44 = vector.shape_cast %43 : vector<2x25xf32> to vector<2x1x25xf32>
    %45 = vector.broadcast %44 : vector<2x1x25xf32> to vector<2x8x25xf32>
    %46 = arith.subf %28, %45 : vector<2x8x25xf32>
    %47 = math.exp %46 : vector<2x8x25xf32>
    %cst_17 = arith.constant dense<0.000000e+00> : vector<2x25xf32>
    %48 = vector.multi_reduction <add>, %47, %cst_17 [1] : vector<2x8x25xf32> to vector<2x25xf32>
    %49 = vector.shape_cast %48 : vector<2x25xf32> to vector<2x1x25xf32>
    %50 = vector.broadcast %49 : vector<2x1x25xf32> to vector<2x8x25xf32>
    %51 = arith.divf %47, %50 : vector<2x8x25xf32>
    %52 = arith.maximumf %15, %29 : vector<2x8x25xf32>
    %53 = arith.subf %15, %52 : vector<2x8x25xf32>
    %54 = math.exp %53 : vector<2x8x25xf32>
    %55 = arith.subf %29, %52 : vector<2x8x25xf32>
    %56 = math.exp %55 : vector<2x8x25xf32>
    %57 = arith.addf %54, %56 : vector<2x8x25xf32>
    %58 = tpu.reciprocal %57 {approx = true} : vector<2x8x25xf32> -> vector<2x8x25xf32>
    %59 = arith.mulf %54, %58 : vector<2x8x25xf32>
    %60 = arith.mulf %56, %58 : vector<2x8x25xf32>
    %61 = arith.mulf %40, %13 : vector<2x8x25xf32>
    %62 = arith.mulf %51, %27 : vector<2x8x25xf32>
    %63 = arith.mulf %61, %59 : vector<2x8x25xf32>
    %64 = arith.mulf %62, %60 : vector<2x8x25xf32>
    %65 = arith.addf %63, %64 : vector<2x8x25xf32>
    %cst_18 = arith.constant dense<0.000000e+00> : vector<2x25xf32>
    %66 = vector.multi_reduction <add>, %65, %cst_18 [1] : vector<2x8x25xf32> to vector<2x25xf32>
    %c0_19 = arith.constant 0 : index
    %c0_20 = arith.constant 0 : index
    %c0_21 = arith.constant 0 : index
    %67 = vector.load %arg5[%c0_19, %c0_20, %c0_21] : memref<3x2x25xf32, #tpu.memory_space<vmem>>, vector<1x2x25xf32>
    %68 = vector.shape_cast %67 : vector<1x2x25xf32> to vector<2x25xf32>
    %69 = vector.shape_cast %66 : vector<2x25xf32> to vector<1x2x25xf32>
    tpu.vector_store %arg5[%c0_19, %c0_20, %c0_21], %69 {strides = array<i32>} : memref<3x2x25xf32, #tpu.memory_space<vmem>>, vector<1x2x25xf32>,
    %cst_22 = arith.constant dense<0.000000e+00> : vector<2x25xf32>
    %70 = vector.multi_reduction <add>, %61, %cst_22 [1] : vector<2x8x25xf32> to vector<2x25xf32>
    %c1 = arith.constant 1 : index
    %c0_23 = arith.constant 0 : index
    %c0_24 = arith.constant 0 : index
    %71 = vector.load %arg5[%c1, %c0_23, %c0_24] : memref<3x2x25xf32, #tpu.memory_space<vmem>>, vector<1x2x25xf32>
    %72 = vector.shape_cast %71 : vector<1x2x25xf32> to vector<2x25xf32>
    %73 = vector.shape_cast %70 : vector<2x25xf32> to vector<1x2x25xf32>
    tpu.vector_store %arg5[%c1, %c0_23, %c0_24], %73 {strides = array<i32>} : memref<3x2x25xf32, #tpu.memory_space<vmem>>, vector<1x2x25xf32>,
    %cst_25 = arith.constant dense<0.000000e+00> : vector<2x25xf32>
    %74 = vector.multi_reduction <add>, %62, %cst_25 [1] : vector<2x8x25xf32> to vector<2x25xf32>
    %c2 = arith.constant 2 : index
    %c0_26 = arith.constant 0 : index
    %c0_27 = arith.constant 0 : index
    %75 = vector.load %arg5[%c2, %c0_26, %c0_27] : memref<3x2x25xf32, #tpu.memory_space<vmem>>, vector<1x2x25xf32>
    %76 = vector.shape_cast %75 : vector<1x2x25xf32> to vector<2x25xf32>
    %77 = vector.shape_cast %74 : vector<2x25xf32> to vector<1x2x25xf32>
    tpu.vector_store %arg5[%c2, %c0_26, %c0_27], %77 {strides = array<i32>} : memref<3x2x25xf32, #tpu.memory_space<vmem>>, vector<1x2x25xf32>,
    %c0_28 = arith.constant 0 : index
    %c0_29 = arith.constant 0 : index
    %c0_30 = arith.constant 0 : index
    %78 = vector.load %arg6[%c0_28, %c0_29, %c0_30] : memref<2x8x50xf32, #tpu.memory_space<vmem>>, vector<2x8x25xf32>
    tpu.vector_store %arg6[%c0_28, %c0_29, %c0_30], %13 {strides = array<i32>} : memref<2x8x50xf32, #tpu.memory_space<vmem>>, vector<2x8x25xf32>,
    %c0_31 = arith.constant 0 : index
    %c0_32 = arith.constant 0 : index
    %c25 = arith.constant 25 : index
    %79 = vector.load %arg6[%c0_31, %c0_32, %c25] : memref<2x8x50xf32, #tpu.memory_space<vmem>>, vector<2x8x25xf32>
    tpu.vector_store %arg6[%c0_31, %c0_32, %c25], %27 {strides = array<i32>} : memref<2x8x50xf32, #tpu.memory_space<vmem>>, vector<2x8x25xf32>,
    return
  }
  func.func @transform_0(%arg0: i32) -> (i32, i32, i32) {
    %c0_i32 = arith.constant 0 : i32
    %c0_i32_0 = arith.constant 0 : i32
    %c0_i32_1 = arith.constant 0 : i32
    return %arg0, %c0_i32, %c0_i32_0 : i32, i32, i32
  }
  func.func @transform_1(%arg0: i32) -> (i32, i32, i32) {
    %c0_i32 = arith.constant 0 : i32
    %c0_i32_0 = arith.constant 0 : i32
    %c0_i32_1 = arith.constant 0 : i32
    return %arg0, %c0_i32, %c0_i32_0 : i32, i32, i32
  }
  func.func @transform_2(%arg0: i32) -> (i32, i32) {
    %c0_i32 = arith.constant 0 : i32
    %c0_i32_0 = arith.constant 0 : i32
    %c0_i32_1 = arith.constant 0 : i32
    return %c0_i32, %c0_i32_0 : i32, i32
  }
  func.func @transform_3(%arg0: i32) -> (i32, i32) {
    %c0_i32 = arith.constant 0 : i32
    %c0_i32_0 = arith.constant 0 : i32
    %c0_i32_1 = arith.constant 0 : i32
    return %c0_i32, %c0_i32_0 : i32, i32
  }
  func.func @transform_4(%arg0: i32) -> (i32, i32, i32) {
    %c0_i32 = arith.constant 0 : i32
    %c0_i32_0 = arith.constant 0 : i32
    %c0_i32_1 = arith.constant 0 : i32
    return %c0_i32, %arg0, %c0_i32_0 : i32, i32, i32
  }
  func.func @transform_5(%arg0: i32) -> (i32, i32, i32) {
    %c0_i32 = arith.constant 0 : i32
    %c0_i32_0 = arith.constant 0 : i32
    %c0_i32_1 = arith.constant 0 : i32
    return %arg0, %c0_i32, %c0_i32_0 : i32, i32, i32
  }
}

</mosaic_0001>

<bundles_post_ra>
// kernel: tpu_custom_call.1
= control target key start
LH: loop header
LB: loop body
LE: loop exit
PB: predicated region body
PF: predicated region fallthrough
CT: control target
= control target key end

     0   :  { %11 = vsyncpa [#allocation3], 0  ;;  %s1408_s0 = inlined_call_operand.vmem [shape: f32[2,8,512], index: 0, kind: input, shape index: {}]   ;;  %s1409_s1 = inlined_call_operand.vmem [shape: f32[2,8,512], index: 1, kind: input, shape index: {}]   ;;  %s1410_s2 = inlined_call_operand.vmem [shape: f32[512,75], index: 2, kind: input, shape index: {}]   ;;  %s1411_s3 = inlined_call_operand.vmem [shape: f32[1,75], index: 3, kind: input, shape index: {}]   ;;  %s1412_s4 = inlined_call_operand.hbm [shape: f32[3,2,25], index: 4, kind: output, shape index: {0}]   ;;  %s1413_s5 = inlined_call_operand.hbm [shape: f32[2,8,50], index: 5, kind: output, shape index: {1}]  }
   0x1   :  { %v816_v0 = vld [vmem:[%s1410_s2 + $0x178] sm:$0xff]  ;;  %v826_v2 = vld [vmem:[%s1410_s2 + $0x170] sm:$0xff]  ;;  %v850_v6 = vld [vmem:[%s1410_s2 + $0x168] sm:$0xff] }
   0x2   :  { %v821_v1 = vld [vmem:[%s1410_s2 + $0x78] sm:$0xff]  ;;  %143 = vmatpush.msra.mxu2 %v816_v0  ;;  %v838_v4 = vld [vmem:[%s1410_s2 + $0x70] sm:$0xff]  ;;  %v860_v8 = vld [vmem:[%s1410_s2 + $0x68] sm:$0xff] }
   0x3   :  { %97 = vmatpush.msra.mxu0 %v821_v1  ;;  %v833_v3 = vld [vmem:[%s1410_s2 + $0x1f8] sm:$0xff]  ;;  %v855_v7 = vld [vmem:[%s1410_s2 + $0x1f0] sm:$0xff]  ;;  %v872_v10 = vld [vmem:[%s1410_s2 + $0x1e8] sm:$0xff] }
   0x4   :  { %v843_v5 = vld [vmem:[%s1410_s2 + $0xf8] sm:$0xff]  ;;  %166 = vmatpush.msra.mxu3 %v833_v3  ;;  %144 = vmatpush.msra.mxu2 %v826_v2  ;;  %v867_v9 = vld [vmem:[%s1410_s2 + $0xf0] sm:$0xff]  ;;  %v879_v11 = vld [vmem:[%s1410_s2 + $0x160] sm:$0xff] }
   0x5   :  { %120 = vmatpush.msra.mxu1 %v843_v5  ;;  %98 = vmatpush.msra.mxu0 %v838_v4  ;;  %v884_v12 = vld [vmem:[%s1410_s2 + $0x60] sm:$0xff]  ;;  %v889_v13 = vld [vmem:[%s1410_s2 + $0xe8] sm:$0xff]  ;;  %v908_v16 = vld [vmem:[%s1410_s2 + $0x158] sm:$0xff] }
   0x6   :  { %167 = vmatpush.msra.mxu3 %v855_v7  ;;  %145 = vmatpush.msra.mxu2 %v850_v6  ;;  %v896_v14 = vld [vmem:[%s1410_s2 + $0x1e0] sm:$0xff]  ;;  %v913_v17 = vld [vmem:[%s1410_s2 + $0x58] sm:$0xff]  ;;  %v932_v20 = vld [vmem:[%s1410_s2 + $0x150] sm:$0xff] }
   0x7   :  { %121 = vmatpush.msra.mxu1 %v867_v9  ;;  %99 = vmatpush.msra.mxu0 %v860_v8  ;;  %v901_v15 = vld [vmem:[%s1410_s2 + $0xe0] sm:$0xff]  ;;  %v920_v18 = vld [vmem:[%s1410_s2 + $0x1d8] sm:$0xff]  ;;  %v937_v21 = vld [vmem:[%s1410_s2 + $0x50] sm:$0xff] }
   0x8   :  { %168 = vmatpush.msra.mxu3 %v872_v10  ;;  %146 = vmatpush.msra.mxu2 %v879_v11  ;;  %v925_v19 = vld [vmem:[%s1410_s2 + $0xd8] sm:$0xff]  ;;  %v944_v22 = vld [vmem:[%s1410_s2 + $0x1d0] sm:$0xff]  ;;  %v956_v24 = vld [vmem:[%s1410_s2 + $0x148] sm:$0xff] }
   0x9   :  { %122 = vmatpush.msra.mxu1 %v889_v13  ;;  %100 = vmatpush.msra.mxu0 %v884_v12  ;;  %v949_v23 = vld [vmem:[%s1410_s2 + $0xd0] sm:$0xff]  ;;  %v961_v25 = vld [vmem:[%s1410_s2 + $0x48] sm:$0xff]  ;;  %v980_v28 = vld [vmem:[%s1410_s2 + $0x140] sm:$0xff] }
   0xa   :  { %169 = vmatpush.msra.mxu3 %v896_v14  ;;  %147 = vmatpush.msra.mxu2 %v908_v16  ;;  %v968_v26 = vld [vmem:[%s1410_s2 + $0x1c8] sm:$0xff]  ;;  %v985_v29 = vld [vmem:[%s1410_s2 + $0x40] sm:$0xff]  ;;  %v1004_v32 = vld [vmem:[%s1410_s2 + $0x138] sm:$0xff] }
   0xb   :  { %123 = vmatpush.msra.mxu1 %v901_v15  ;;  %101 = vmatpush.msra.mxu0 %v913_v17  ;;  %v973_v27 = vld [vmem:[%s1410_s2 + $0xc8] sm:$0xff]  ;;  %v992_v30 = vld [vmem:[%s1410_s2 + $0x1c0] sm:$0xff]  ;;  %v1009_v33 = vld [vmem:[%s1410_s2 + $0x38] sm:$0xff] }
   0xc   :  { %170 = vmatpush.msra.mxu3 %v920_v18  ;;  %148 = vmatpush.msra.mxu2 %v932_v20  ;;  %v997_v31 = vld [vmem:[%s1410_s2 + $0xc0] sm:$0xff]  ;;  %v1016_v34 = vld [vmem:[%s1410_s2 + $0x1b8] sm:$0xff]  ;;  %v1028_v36 = vld [vmem:[%s1410_s2 + $0x130] sm:$0xff] }
   0xd   :  { %124 = vmatpush.msra.mxu1 %v925_v19  ;;  %102 = vmatpush.msra.mxu0 %v937_v21  ;;  %v1021_v35 = vld [vmem:[%s1410_s2 + $0xb8] sm:$0xff]  ;;  %v1033_v37 = vld [vmem:[%s1410_s2 + $0x30] sm:$0xff]  ;;  %v1052_v40 = vld [vmem:[%s1410_s2 + $0x128] sm:$0xff] }
   0xe   :  { %171 = vmatpush.msra.mxu3 %v944_v22  ;;  %149 = vmatpush.msra.mxu2 %v956_v24  ;;  %v1040_v38 = vld [vmem:[%s1410_s2 + $0x1b0] sm:$0xff]  ;;  %v1057_v41 = vld [vmem:[%s1410_s2 + $0x28] sm:$0xff]  ;;  %v1076_v44 = vld [vmem:[%s1410_s2 + $0x120] sm:$0xff] }
   0xf   :  { %125 = vmatpush.msra.mxu1 %v949_v23  ;;  %103 = vmatpush.msra.mxu0 %v961_v25  ;;  %v1045_v39 = vld [vmem:[%s1410_s2 + $0xb0] sm:$0xff]  ;;  %v1064_v42 = vld [vmem:[%s1410_s2 + $0x1a8] sm:$0xff]  ;;  %v1081_v45 = vld [vmem:[%s1410_s2 + $0x20] sm:$0xff] }
  0x10   :  { %172 = vmatpush.msra.mxu3 %v968_v26  ;;  %150 = vmatpush.msra.mxu2 %v980_v28  ;;  %v1069_v43 = vld [vmem:[%s1410_s2 + $0xa8] sm:$0xff]  ;;  %v1088_v46 = vld [vmem:[%s1410_s2 + $0x1a0] sm:$0xff]  ;;  %v1100_v48 = vld [vmem:[%s1410_s2 + $0x118] sm:$0xff] }
  0x11   :  { %126 = vmatpush.msra.mxu1 %v973_v27  ;;  %104 = vmatpush.msra.mxu0 %v985_v29  ;;  %v1093_v47 = vld [vmem:[%s1410_s2 + $0xa0] sm:$0xff]  ;;  %v1105_v49 = vld [vmem:[%s1410_s2 + $0x18] sm:$0xff]  ;;  %v1112_v50 = vld [vmem:[%s1410_s2 + $0x110] sm:$0xff] }
  0x12   :  { %173 = vmatpush.msra.mxu3 %v992_v30  ;;  %151 = vmatpush.msra.mxu2 %v1004_v32  ;;  %v1117_v51 = vld [vmem:[%s1410_s2 + $0x198] sm:$0xff]  ;;  %v1129_v53 = vld [vmem:[%s1410_s2 + $0x10] sm:$0xff] }
  0x13   :  { %127 = vmatpush.msra.mxu1 %v997_v31  ;;  %105 = vmatpush.msra.mxu0 %v1009_v33  ;;  %v1122_v52 = vld [vmem:[%s1410_s2 + $0x98] sm:$0xff] }
  0x14   :  { %174 = vmatpush.msra.mxu3 %v1016_v34  ;;  %152 = vmatpush.msra.mxu2 %v1028_v36 }
  0x15   :  { %128 = vmatpush.msra.mxu1 %v1021_v35  ;;  %106 = vmatpush.msra.mxu0 %v1033_v37 }
  0x16   :  { %175 = vmatpush.msra.mxu3 %v1040_v38  ;;  %153 = vmatpush.msra.mxu2 %v1052_v40 }
  0x17   :  { %129 = vmatpush.msra.mxu1 %v1045_v39  ;;  %107 = vmatpush.msra.mxu0 %v1057_v41 }
  0x18   :  { %176 = vmatpush.msra.mxu3 %v1064_v42  ;;  %154 = vmatpush.msra.mxu2 %v1076_v44 }
  0x19   :  { %130 = vmatpush.msra.mxu1 %v1069_v43  ;;  %108 = vmatpush.msra.mxu0 %v1081_v45 }
  0x1a   :  { %177 = vmatpush.msra.mxu3 %v1088_v46 }
  0x1b   :  { %131 = vmatpush.msra.mxu1 %v1093_v47 }
  0x1c   :  { %12 = vsyncpa [#allocation5], 0  ;;  %155 = vmatpush.msra.mxu2 %v1100_v48  ;;  %109 = vmatpush.msra.mxu0 %v1105_v49  ;;  %v1136_v54 = vld [vmem:[%s1410_s2 + $0x190] sm:$0xff]  ;;  %v1148_v56 = vld [vmem:[%s1410_s2 + $0x108] sm:$0xff]  ;;  %vm625_vm4 = vcmask 203776   ;;  %vm365_vm9 = vcmask 408776  }
  0x1d   :  { %v1141_v55 = vld [vmem:[%s1410_s2 + $0x90] sm:$0xff]  ;;  %178 = vmatpush.msra.mxu3 %v1117_v51  ;;  %132 = vmatpush.msra.mxu1 %v1122_v52  ;;  %v1153_v57 = vld [vmem:[%s1410_s2 + $0x8] sm:$0xff]  ;;  %v1172_v60 = vld [vmem:[%s1410_s2 + $0x100] sm:$0xff]  ;;  %s777_s28 = smov [#allocation4]   ;;  %s649_s6 = sshll.u32 %s1413_s5, 4  ;;  %s650_s6 = int_to_ptr.hbm [resolvable:$true] %s649_s6 }
  0x1e   :  { %1418 = vst [vmem:[#allocation8_spill] sm:$0xff] %v1141_v55  ;;  %156 = vmatpush.msra.mxu2 %v1112_v50  ;;  %110 = vmatpush.msra.mxu0 %v1129_v53  ;;  %v1160_v58 = vld [vmem:[%s1410_s2 + $0x188] sm:$0xff]  ;;  %v1177_v61 = vld [vmem:[%s1410_s2] sm:$0xff]  ;;  %v88_v62 = vld [vmem:[%s1408_s0 + $0x10] sm:$0xff]  ;;  %s778_s7 = smov 128   ;;  %s779_s8 = smov 8  }
  0x1f   :  { %1419 = vst [vmem:[#allocation9_spill] sm:$0xff] %v1153_v57  ;;  %v1165_v59 = vld [vmem:[%s1410_s2 + $0x88] sm:$0xff]  ;;  %179 = vmatpush.msra.mxu3 %v1136_v54  ;;  %133 = vmatpush.msra.mxu1 %v1141_v55  ;;  %v1187_v63 = vld [vmem:[%s1410_s2 + $0x180] sm:$0xff]  ;;  %s780_s5 = smov [#allocation2]   ;;  %s636_s11 = sshll.u32 %s1412_s4, 4  ;;  %s637_s11 = int_to_ptr.hbm [resolvable:$true] %s636_s11 }
  0x20   :  { %1420 = vst [vmem:[#allocation10_spill] sm:$0xff] %v1165_v59  ;;  %157 = vmatpush.msra.mxu2 %v1148_v56  ;;  %111 = vmatpush.msra.mxu0 %v1153_v57  ;;  %v86_v55 = vld [vmem:[%s1408_s0] sm:$0xff]  ;;  %v89_v57 = vld [vmem:[%s1408_s0 + $0x18] sm:$0xff]  ;;  %s634_s9 = sshll.u32 %s780_s5, 4  ;;  %s781_s12 = smov 32   ;;  %s635_s9 = int_to_ptr.vmem [resolvable:$true] %s634_s9 }
  0x21   :  { %1421 = vst [vmem:[#allocation11_spill] sm:$0xff] %v1177_v61  ;;  %180 = vmatpush.msra.mxu3 %v1160_v58  ;;  %134 = vmatpush.msra.mxu1 %v1165_v59  ;;  %v1204_v59 = vld [vmem:[%s1410_s2 + $0x80] sm:$0xff]  ;;  %s647_s2 = sshll.u32 %s777_s28, 4  ;;  %s782_s13 = smov 2   ;;  %s648_s2 = int_to_ptr.vmem [resolvable:$true] %s647_s2 }
  0x22   :  { %158 = vmatpush.msra.mxu2 %v1172_v60  ;;  %112 = vmatpush.msra.mxu0 %v1177_v61  ;;  %v87_v61 = vld [vmem:[%s1408_s0 + $0x8] sm:$0xff] }
  0x23   :  { %159 = vmatmul.f32.vlgmr.msra.gmra.mxu2 %v88_v62  ;;  %181 = vmatpush.msra.mxu3 %v1187_v63 }
  0x24   :  { %281 = vmatpush.msrb.mxu2 %v816_v0  ;;  %113 = vmatmul.f32.vlgmr.msra.gmra.mxu0 %v86_v55  ;;  %v92_v0 = vld [vmem:[%s1408_s0 + $0x30] sm:$0xff] }
  0x25   :  { %182 = vmatmul.f32.vlgmr.msra.gmra.mxu3 %v89_v57  ;;  %235 = vmatpush.msrb.mxu0 %v821_v1  ;;  %v90_v1 = vld [vmem:[%s1408_s0 + $0x20] sm:$0xff] }
  0x26   :  { %282 = vmatpush.msrb.mxu2 %v826_v2  ;;  %304 = vmatpush.msrb.mxu3 %v833_v3  ;;  %v93_v2 = vld [vmem:[%s1408_s0 + $0x38] sm:$0xff]  ;;  %v91_v3 = vld [vmem:[%s1408_s0 + $0x28] sm:$0xff] }
  0x27   :  { %135 = vmatpush.msra.mxu1 %v1204_v59  ;;  %236 = vmatpush.msrb.mxu0 %v838_v4  ;;  %v229_v4 = vld [vmem:[%s1409_s1 + $0x10] sm:$0xff] }
  0x28   :  { %136 = vmatmul.f32.vlgmr.msra.gmra.mxu1 %v87_v61  ;;  %283 = vmatpush.msrb.mxu2 %v850_v6  ;;  %v1423_v6 = vld [vmem:[#allocation8_spill] sm:$0xff] }
  0x29   :  { %258 = vmatpush.msrb.mxu1 %v843_v5  ;;  %305 = vmatpush.msrb.mxu3 %v855_v7  ;;  %v1422_v5 = vld [vmem:[#allocation9_spill] sm:$0xff] }
  0x2a   :  { %237 = vmatpush.msrb.mxu0 %v860_v8  ;;  %284 = vmatpush.msrb.mxu2 %v879_v11  ;;  %v227_v7 = vld [vmem:[%s1409_s1] sm:$0xff]  ;;  %v230_v8 = vld [vmem:[%s1409_s1 + $0x18] sm:$0xff]  ;;  %v228_v11 = vld [vmem:[%s1409_s1 + $0x8] sm:$0xff] }
  0x2b   :  { %259 = vmatpush.msrb.mxu1 %v867_v9  ;;  %306 = vmatpush.msrb.mxu3 %v872_v10  ;;  %v1424_v9 = vld [vmem:[#allocation11_spill] sm:$0xff]  ;;  %v1425_v10 = vld [vmem:[#allocation10_spill] sm:$0xff] }
  0x2c   :  { %162 = vmatmul.f32.gmra.mxu2 %v92_v0  ;;  %238 = vmatpush.msrb.mxu0 %v884_v12  ;;  %v233_v12 = vld [vmem:[%s1409_s1 + $0x30] sm:$0xff] }
  0x2d   :  { %260 = vmatpush.msrb.mxu1 %v889_v13  ;;  %285 = vmatpush.msrb.mxu2 %v908_v16  ;;  %v231_v13 = vld [vmem:[%s1409_s1 + $0x20] sm:$0xff] }
  0x2e   :  { %307 = vmatpush.msrb.mxu3 %v896_v14  ;;  %116 = vmatmul.f32.gmra.mxu0 %v90_v1  ;;  %v234_v14 = vld [vmem:[%s1409_s1 + $0x38] sm:$0xff]  ;;  %v1312_v16 = vld [vmem:[%s1411_s3] ss:$0 sm:$0xff]  ;;  %s776_s3 = smov 103  }
  0x2f   :  { %185 = vmatmul.f32.gmra.mxu3 %v93_v2  ;;  %239 = vmatpush.msrb.mxu0 %v913_v17 }
  0x30   :  { %261 = vmatpush.msrb.mxu1 %v901_v15  ;;  %286 = vmatpush.msrb.mxu2 %v932_v20  ;;  %v232_v15 = vld [vmem:[%s1409_s1 + $0x28] sm:$0xff]  ;;  %s775_s1 = smov 25  }
  0x31   :  { %308 = vmatpush.msrb.mxu3 %v920_v18  ;;  %139 = vmatmul.f32.gmra.mxu1 %v91_v3 }
  0x32   :  { %240 = vmatpush.msrb.mxu0 %v937_v21  ;;  %262 = vmatpush.msrb.mxu1 %v925_v19 }
  0x33   :  { %287 = vmatpush.msrb.mxu2 %v956_v24  ;;  %309 = vmatpush.msrb.mxu3 %v944_v22 }
  0x34   :  { %241 = vmatpush.msrb.mxu0 %v961_v25  ;;  %263 = vmatpush.msrb.mxu1 %v949_v23 }
  0x35   :  { %288 = vmatpush.msrb.mxu2 %v980_v28  ;;  %310 = vmatpush.msrb.mxu3 %v968_v26 }
  0x36   :  { %242 = vmatpush.msrb.mxu0 %v985_v29  ;;  %264 = vmatpush.msrb.mxu1 %v973_v27 }
  0x37   :  { %289 = vmatpush.msrb.mxu2 %v1004_v32  ;;  %311 = vmatpush.msrb.mxu3 %v992_v30 }
  0x38   :  { %243 = vmatpush.msrb.mxu0 %v1009_v33  ;;  %265 = vmatpush.msrb.mxu1 %v997_v31 }
  0x39   :  { %290 = vmatpush.msrb.mxu2 %v1028_v36  ;;  %312 = vmatpush.msrb.mxu3 %v1016_v34 }
  0x3a   :  { %244 = vmatpush.msrb.mxu0 %v1033_v37  ;;  %266 = vmatpush.msrb.mxu1 %v1021_v35 }
  0x3b   :  { %291 = vmatpush.msrb.mxu2 %v1052_v40  ;;  %313 = vmatpush.msrb.mxu3 %v1040_v38 }
  0x3c   :  { %245 = vmatpush.msrb.mxu0 %v1057_v41  ;;  %267 = vmatpush.msrb.mxu1 %v1045_v39 }
  0x3d   :  { %292 = vmatpush.msrb.mxu2 %v1076_v44  ;;  %314 = vmatpush.msrb.mxu3 %v1064_v42 }
  0x3e   :  { %246 = vmatpush.msrb.mxu0 %v1081_v45  ;;  %268 = vmatpush.msrb.mxu1 %v1069_v43 }
  0x3f   :  { %293 = vmatpush.msrb.mxu2 %v1100_v48  ;;  %315 = vmatpush.msrb.mxu3 %v1088_v46 }
  0x40   :  { %247 = vmatpush.msrb.mxu0 %v1105_v49  ;;  %269 = vmatpush.msrb.mxu1 %v1093_v47 }
  0x41   :  { %294 = vmatpush.msrb.mxu2 %v1112_v50  ;;  %316 = vmatpush.msrb.mxu3 %v1117_v51 }
  0x42   :  { %248 = vmatpush.msrb.mxu0 %v1129_v53  ;;  %270 = vmatpush.msrb.mxu1 %v1122_v52 }
  0x43   :  { %295 = vmatpush.msrb.mxu2 %v1148_v56  ;;  %317 = vmatpush.msrb.mxu3 %v1136_v54 }
  0x44   :  { %249 = vmatpush.msrb.mxu0 %v1422_v5  ;;  %271 = vmatpush.msrb.mxu1 %v1423_v6 }
  0x45   :  { %296 = vmatpush.msrb.mxu2 %v1172_v60  ;;  %318 = vmatpush.msrb.mxu3 %v1160_v58 }
  0x46   :  { %297 = vmatmul.f32.vlgmr.msrb.gmra.mxu2 %v229_v4  ;;  %250 = vmatpush.msrb.mxu0 %v1424_v9 }
  0x47   :  { %272 = vmatpush.msrb.mxu1 %v1425_v10  ;;  %319 = vmatpush.msrb.mxu3 %v1187_v63 }
  0x48   :  { %251 = vmatmul.f32.vlgmr.msrb.gmra.mxu0 %v227_v7  ;;  %320 = vmatmul.f32.vlgmr.msrb.gmra.mxu3 %v230_v8 }
  0x49   :  { %273 = vmatpush.msrb.mxu1 %v1204_v59 }
  0x4a   :  { %274 = vmatmul.f32.vlgmr.msrb.gmra.mxu1 %v228_v11 }
  0x4e   :  { %300 = vmatmul.f32.gmra.mxu2 %v233_v12 }
  0x50   :  { %254 = vmatmul.f32.gmra.mxu0 %v231_v13  ;;  %323 = vmatmul.f32.gmra.mxu3 %v234_v14 }
  0x52   :  { %277 = vmatmul.f32.gmra.mxu1 %v232_v15 }
  0xa1   :  { %v114_v17 = vpop.f32.mrf.mxu0 }
  0xa2   :  { %v115_v18 = vadd.f32 %v1312_v16, %v114_v17 }
  0xa5   :  { %v137_v19 = vpop.f32.mrf.mxu1 }
  0xa6   :  { %v138_v20 = vadd.f32 %v137_v19, %v115_v18  ;;  %v160_v21 = vpop.f32.mrf.mxu2 }
  0xa8   :  { %v161_v22 = vadd.f32 %v160_v21, %v138_v20  ;;  %v183_v23 = vpop.f32.mrf.mxu3 }
  0xaa   :  { %v1315_v24 = vadd.f32 %v183_v23, %v161_v22 }
  0xab   :  { %v117_v25 = vpop.f32.mrf.mxu0 }
  0xac   :  { %v666_v26 = vmul.f32 -1.442695, %v1315_v24  ;;  %v118_v27 = vadd.f32 %v1312_v16, %v117_v25  ;;  %v366_v12 = vsel %vm365_vm9, %v1315_v24, -inf }
  0xad   :  { %v367_v18 = vrot.slane %v366_v12, 4 }
  0xae   :  { %679 = vpow2.f32 %v666_v26  ;;  %v140_v28 = vpop.f32.mrf.mxu1 }
  0xaf   :  { %v141_v29 = vadd.f32 %v140_v28, %v118_v27  ;;  %v163_v30 = vpop.f32.mrf.mxu2  ;;  %v368_v26 = vmax.f32 %v366_v12, %v367_v18 }
  0xb1   :  { %v164_v31 = vadd.f32 %v163_v30, %v141_v29 }
  0xb2   :  { %v186_v32 = vpop.f32.mrf.mxu3 }
  0xb3   :  { %v1319_v33 = vadd.f32 %v186_v32, %v164_v31  ;;  %v369_v32 = vrot.slane %v368_v26, 2 }
  0xb4   :  { %v680_v34 = vpop.eup %679 }
  0xb5   :  { %v195_v35 = vadd.f32 1.0, %v680_v34  ;;  %v667_v36 = vmul.f32 -1.442695, %v1319_v33  ;;  %v373_v31 = vsel %vm365_vm9, %v1319_v33, -inf }
  0xb7   :  { %681 = vrcp.f32 %v195_v35  ;;  %v208_v41 = vand.u32 2147483648, %v195_v35  ;;  %vm202_vm0 = vweird.f32 %v195_v35  ;;  %v206_v43 = vand.u32 2147483647, %v195_v35 }
  0xb8   :  { %683 = vpow2.f32 %v667_v36 }
  0xb9   :  { %v209_v45 = vor.u32 1.1754944e-38, %v208_v41  ;;  %vm207_vm3 = vcmp.eq.f32.partialorder %v206_v43, 8.507059e+37 }
  0xbd   :  { %v682_v37 = vpop.eup %681 }
  0xbe   :  { %v684_v38 = vpop.eup %683  ;;  %v198_v39 = vmul.f32 %v682_v37, %v195_v35  ;;  %vm203_vm1 = vweird.f32 %v682_v37 }
  0xbf   :  { %v196_v40 = vadd.f32 1.0, %v684_v38  ;;  %vm204_vm2 = vmor %vm202_vm0, %vm203_vm1 }
  0xc0   :  { %v199_v42 = vsub.f32 1.0, %v198_v39 }
  0xc1   :  { %685 = vrcp.f32 %v196_v40  ;;  %vm217_vm5 = vweird.f32 %v196_v40  ;;  %v223_v56 = vand.u32 2147483648, %v196_v40  ;;  %v221_v59 = vand.u32 2147483647, %v196_v40 }
  0xc2   :  { %v200_v44 = vmul.f32 %v682_v37, %v199_v42 }
  0xc3   :  { %v224_v0 = vor.u32 1.1754944e-38, %v223_v56  ;;  %vm222_vm8 = vcmp.eq.f32.partialorder %v221_v59, 8.507059e+37 }
  0xc4   :  { %v201_v46 = vadd.f32 %v682_v37, %v200_v44 }
  0xc5   :  { %v252_v47 = vpop.f32.mrf.mxu0 }
  0xc6   :  { %v253_v48 = vadd.f32 %v1312_v16, %v252_v47  ;;  %v205_v49 = vsel %vm204_vm2, %v682_v37, %v201_v46  ;;  %v374_v37 = vrot.slane %v373_v31, 4 }
  0xc7   :  { %v686_v50 = vpop.eup %685  ;;  %v275_v51 = vpop.f32.mrf.mxu1  ;;  %v210_v52 = vsel %vm207_vm3, %v209_v45, %v205_v49 }
  0xc8   :  { %v276_v53 = vadd.f32 %v275_v51, %v253_v48  ;;  %518 = vrot.lane.b32.xlu0 %v210_v52, %s775_s1  ;;  %626 = vst.msk [vmem:[#allocation4] sm:$0xff] %vm625_vm4, %v210_v52  ;;  %v213_v54 = vmul.f32 %v686_v50, %v196_v40  ;;  %vm218_vm6 = vweird.f32 %v686_v50  ;;  %v370_v40 = vmax.f32 %v368_v26, %v369_v32 }
  0xc9   :  { %v298_v55 = vpop.f32.mrf.mxu2  ;;  %vm219_vm7 = vmor %vm217_vm5, %vm218_vm6  ;;  %v375_v44 = vmax.f32 %v373_v31, %v374_v37 }
  0xca   :  { %v299_v57 = vadd.f32 %v298_v55, %v276_v53  ;;  %v214_v58 = vsub.f32 1.0, %v213_v54 }
  0xcb   :  { %v321_v60 = vpop.f32.mrf.mxu3  ;;  %v376_v56 = vrot.slane %v375_v44, 2 }
  0xcc   :  { %v1325_v61 = vadd.f32 %v321_v60, %v299_v57  ;;  %v215_v62 = vmul.f32 %v686_v50, %v214_v58 }
  0xcd   :  { %v255_v63 = vpop.f32.mrf.mxu0 }
  0xce   :  { %v668_v1 = vmul.f32 -1.442695, %v1325_v61  ;;  %v256_v2 = vadd.f32 %v1312_v16, %v255_v63  ;;  %v216_v3 = vadd.f32 %v686_v50, %v215_v62  ;;  %v494_v5 = vmax.f32 %v1315_v24, %v1325_v61 }
  0xcf   :  { %v278_v4 = vpop.f32.mrf.mxu1 }
  0xd0   :  { %687 = vpow2.f32 %v668_v1  ;;  %v279_v6 = vadd.f32 %v278_v4, %v256_v2  ;;  %v220_v7 = vsel %vm219_vm7, %v686_v50, %v216_v3  ;;  %v496_v10 = vsub.f32 %v1315_v24, %v494_v5 }
  0xd1   :  { %v301_v8 = vpop.f32.mrf.mxu2  ;;  %v225_v9 = vsel %vm222_vm8, %v224_v0, %v220_v7  ;;  %v502_v11 = vsub.f32 %v1325_v61, %v494_v5  ;;  %v371_v50 = vrot.slane %v370_v40, 1  ;;  %v377_v3 = vmax.f32 %v375_v44, %v376_v56 }
  0xd2   :  { %v302_v13 = vadd.f32 %v301_v8, %v279_v6  ;;  %627 = vst.msk [vmem:[#allocation4 + $0x8] sm:$0xff] %vm625_vm4, %v225_v9  ;;  %520 = vrot.lane.b32.xlu0 %v225_v9, %s775_s1  ;;  %v498_v15 = vmul.f32 1.442695, %v496_v10 }
  0xd3   :  { %v324_v14 = vpop.f32.mrf.mxu3  ;;  %v504_v16 = vmul.f32 1.442695, %v502_v11  ;;  %v372_v62 = vmax.f32 %v370_v40, %v371_v50  ;;  %v378_v9 = vrot.slane %v377_v3, 1 }
  0xd4   :  { %v1337_v17 = vadd.f32 %v324_v14, %v302_v13  ;;  %689 = vpow2.f32 %v498_v15  ;;  %v430_v13 = vsel %vm365_vm9, %v1325_v61, -inf }
  0xd5   :  { %691 = vpow2.f32 %v504_v16  ;;  %v380_v6 = vsub.f32 %v1315_v24, %v372_v62  ;;  %v379_v12 = vmax.f32 %v377_v3, %v378_v9  ;;  %v431_v14 = vrot.slane %v430_v13, 4 }
  0xd6   :  { %v688_v19 = vpop.eup %687  ;;  %v669_v20 = vmul.f32 -1.442695, %v1337_v17  ;;  %v495_v21 = vmax.f32 %v1319_v33, %v1337_v17 }
  0xd7   :  { %v333_v22 = vadd.f32 1.0, %v688_v19  ;;  %v382_v11 = vmul.f32 1.442695, %v380_v6  ;;  %v381_v24 = vsub.f32 %v1319_v33, %v379_v12  ;;  %v432_v18 = vmax.f32 %v430_v13, %v431_v14 }
  0xd8   :  { %693 = vpow2.f32 %v669_v20  ;;  %v503_v23 = vsub.f32 %v1337_v17, %v495_v21  ;;  %v497_v25 = vsub.f32 %v1319_v33, %v495_v21  ;;  %v437_v20 = vsel %vm365_vm9, %v1337_v17, -inf }
  0xd9   :  { %695 = vrcp.f32 %v333_v22  ;;  %v346_v45 = vand.u32 2147483648, %v333_v22  ;;  %v344_v47 = vand.u32 2147483647, %v333_v22  ;;  %vm340_vm11 = vweird.f32 %v333_v22 }
  0xda   :  { %v506_v27 = vmul.f32 1.442695, %v503_v23  ;;  %v500_v28 = vmul.f32 1.442695, %v497_v25  ;;  %v690_v29 = vpop.eup %689  ;;  %v384_v19 = vmul.f32 1.442695, %v381_v24 }
  0xdb   :  { %v692_v30 = vpop.eup %691  ;;  %v347_v55 = vor.u32 1.1754944e-38, %v346_v45  ;;  %vm345_vm13 = vcmp.eq.f32.partialorder %v344_v47, 8.507059e+37  ;;  %v438_v23 = vrot.slane %v437_v20, 4 }
  0xdc   :  { %697 = vpow2.f32 %v506_v27  ;;  %v508_v34 = vadd.f32 %v692_v30, %v690_v29 }
  0xdd   :  { %699 = vpow2.f32 %v500_v28  ;;  %v439_v26 = vmax.f32 %v437_v20, %v438_v23 }
  0xde   :  { %v694_v35 = vpop.eup %693  ;;  %701 = vrcp.f32 %v508_v34 }
  0xdf   :  { %v696_v36 = vpop.eup %695  ;;  %v334_v38 = vadd.f32 1.0, %v694_v35 }
  0xe0   :  { %v336_v39 = vmul.f32 %v696_v36, %v333_v22  ;;  %vm341_vm10 = vweird.f32 %v696_v36  ;;  %v433_v22 = vrot.slane %v432_v18, 2 }
  0xe1   :  { %703 = vrcp.f32 %v334_v38  ;;  %vm342_vm12 = vmor %vm340_vm11, %vm341_vm10  ;;  %v361_v63 = vand.u32 2147483648, %v334_v38  ;;  %v359_v2 = vand.u32 2147483647, %v334_v38  ;;  %vm355_vm15 = vweird.f32 %v334_v38 }
  0xe2   :  { %v698_v41 = vpop.eup %697  ;;  %v337_v42 = vsub.f32 1.0, %v336_v39  ;;  %v434_v27 = vmax.f32 %v432_v18, %v433_v22  ;;  %vm574_vm11 = vcmask 1041409  }
  0xe3   :  { %v700_v43 = vpop.eup %699  ;;  %v362_v7 = vor.u32 1.1754944e-38, %v361_v63  ;;  %vm360_vm1 = vcmp.eq.f32.partialorder %v359_v2, 8.507059e+37 }
  0xe4   :  { %v338_v46 = vmul.f32 %v696_v36, %v337_v42  ;;  %v509_v48 = vadd.f32 %v700_v43, %v698_v41  ;;  %v702_v49 = vpop.eup %701 }
  0xe5   :  { %v512_v51 = vmul.f32 %v702_v49, %v690_v29  ;;  %v514_v52 = vmul.f32 %v702_v49, %v692_v30  ;;  %v440_v29 = vrot.slane %v439_v26, 2  ;;  %v435_v30 = vrot.slane %v434_v27, 1 }
  0xe6   :  { %v339_v53 = vadd.f32 %v696_v36, %v338_v46  ;;  %705 = vrcp.f32 %v509_v48 }
  0xe7   :  { %v704_v54 = vpop.eup %703  ;;  %538 = vrot.lane.b32.xlu2 %v512_v51, %s776_s3  ;;  %548 = vrot.lane.b32.xlu0 %v514_v52, %s776_s3  ;;  %707 = vpow2.f32 %v382_v11  ;;  %v436_v35 = vmax.f32 %v434_v27, %v435_v30 }
  0xe8   :  { %v343_v57 = vsel %vm342_vm12, %v696_v36, %v339_v53  ;;  %v351_v58 = vmul.f32 %v704_v54, %v334_v38  ;;  %vm356_vm14 = vweird.f32 %v704_v54  ;;  %709 = vpow2.f32 %v384_v19 }
  0xe9   :  { %v348_v59 = vsel %vm345_vm13, %v347_v55, %v343_v57  ;;  %vm357_vm0 = vmor %vm355_vm15, %vm356_vm14  ;;  %v441_v36 = vmax.f32 %v439_v26, %v440_v29  ;;  %v444_v39 = vsub.f32 %v1325_v61, %v436_v35 }
  0xea   :  { %528 = vrot.lane.b32.xlu1 %v348_v59, %s775_s1  ;;  %v352_v60 = vsub.f32 1.0, %v351_v58 }
  0xeb   :  { %v442_v40 = vrot.slane %v441_v36, 1 }
  0xec   :  { %v706_v0 = vpop.eup %705  ;;  %v353_v1 = vmul.f32 %v704_v54, %v352_v60 }
  0xed   :  { %v513_v4 = vmul.f32 %v706_v0, %v700_v43  ;;  %v515_v15 = vmul.f32 %v706_v0, %v698_v41  ;;  %v1356_v16 = vpop.eup %707  ;;  %v446_v43 = vmul.f32 1.442695, %v444_v39  ;;  %v443_v44 = vmax.f32 %v441_v36, %v442_v40 }
  0xee   :  { %v354_v5 = vadd.f32 %v704_v54, %v353_v1  ;;  %v386_v21 = vsel %vm365_vm9, %v1356_v16, 0.0  ;;  %v1362_v28 = vpop.eup %709 }
  0xef   :  { %540 = vrot.lane.b32.xlu2 %v513_v4, %s776_s3  ;;  %v387_v25 = vrot.slane %v386_v21, 4  ;;  %v393_v31 = vsel %vm365_vm9, %v1362_v28, 0.0  ;;  %711 = vpow2.f32 %v446_v43  ;;  %v445_v47 = vsub.f32 %v1337_v17, %v443_v44 }
  0xf0   :  { %v358_v8 = vsel %vm357_vm0, %v704_v54, %v354_v5  ;;  %v394_v34 = vrot.slane %v393_v31, 4 }
  0xf1   :  { %v363_v10 = vsel %vm360_vm1, %v362_v7, %v358_v8  ;;  %v388_v33 = vadd.f32 %v387_v25, %v386_v21  ;;  %v448_v49 = vmul.f32 1.442695, %v445_v47 }
  0xf2   :  { %530 = vrot.lane.b32.xlu1 %v363_v10, %s775_s1  ;;  %v395_v38 = vadd.f32 %v394_v34, %v393_v31 }
  0xf3   :  { %v389_v32 = vrot.slane %v388_v33, 2 }
  0xf4   :  { %v396_v42 = vrot.slane %v395_v38, 2 }
  0xf5   :  { %v390_v37 = vadd.f32 %v389_v32, %v388_v33  ;;  %v1368_v50 = vpop.eup %711 }
  0xf6   :  { %v397_v46 = vadd.f32 %v396_v42, %v395_v38  ;;  %v450_v61 = vsel %vm365_vm9, %v1368_v50, 0.0 }
  0xf7   :  { %v391_v41 = vrot.slane %v390_v37, 1  ;;  %v451_v54 = vrot.slane %v450_v61, 4 }
  0xf8   :  { %v398_v48 = vrot.slane %v397_v46, 1 }
  0xf9   :  { %v392_v45 = vadd.f32 %v391_v41, %v390_v37  ;;  %v452_v57 = vadd.f32 %v451_v54, %v450_v61 }
  0xfa   :  { %550 = vrot.lane.b32.xlu1 %v515_v15, %s776_s3  ;;  %v399_v52 = vadd.f32 %v398_v48, %v397_v46 }
  0xfb   :  { %713 = vrcp.f32 %v392_v45  ;;  %v453_v60 = vrot.slane %v452_v57, 2  ;;  %v411_v1 = vand.u32 2147483648, %v392_v45  ;;  %vm405_vm3 = vweird.f32 %v392_v45 }
  0xfc   :  { %715 = vpow2.f32 %v448_v49  ;;  %v409_v4 = vand.u32 2147483647, %v392_v45  ;;  %v426_v18 = vand.u32 2147483648, %v399_v52  ;;  %vm420_vm7 = vweird.f32 %v399_v52 }
  0xfd   :  { %717 = vrcp.f32 %v399_v52  ;;  %v454_v2 = vadd.f32 %v453_v60, %v452_v57  ;;  %v412_v7 = vor.u32 1.1754944e-38, %v411_v1  ;;  %v424_v20 = vand.u32 2147483647, %v399_v52 }
  0xfe   :  { %vm410_vm5 = vcmp.eq.f32.partialorder %v409_v4, 8.507059e+37  ;;  %v427_v26 = vor.u32 1.1754944e-38, %v426_v18 }
  0xff   :  { %v455_v8 = vrot.slane %v454_v2, 1  ;;  %vm425_vm10 = vcmp.eq.f32.partialorder %v424_v20, 8.507059e+37 }
 0x101   :  { %v714_v51 = vpop.eup %713  ;;  %v456_v12 = vadd.f32 %v455_v8, %v454_v2 }
 0x102   :  { %v401_v53 = vmul.f32 %v714_v51, %v392_v45  ;;  %v1372_v55 = vpop.eup %715  ;;  %vm406_vm2 = vweird.f32 %v714_v51 }
 0x103   :  { %v457_v17 = vsel %vm365_vm9, %v1372_v55, 0.0  ;;  %v718_v58 = vpop.eup %717  ;;  %vm407_vm4 = vmor %vm405_vm3, %vm406_vm2  ;;  %719 = vrcp.f32 %v456_v12  ;;  %vm469_vm13 = vweird.f32 %v456_v12  ;;  %v473_v61 = vand.u32 2147483647, %v456_v12 }
 0x104   :  { %v402_v56 = vsub.f32 1.0, %v401_v53  ;;  %v458_v62 = vrot.slane %v457_v17, 4  ;;  %v416_v63 = vmul.f32 %v718_v58, %v399_v52  ;;  %vm421_vm6 = vweird.f32 %v718_v58 }
 0x105   :  { %vm422_vm8 = vmor %vm420_vm7, %vm421_vm6  ;;  %v475_v52 = vand.u32 2147483648, %v456_v12  ;;  %vm474_vm15 = vcmp.eq.f32.partialorder %v473_v61, 8.507059e+37 }
 0x106   :  { %v403_v59 = vmul.f32 %v714_v51, %v402_v56  ;;  %v459_v3 = vadd.f32 %v458_v62, %v457_v17  ;;  %v417_v5 = vsub.f32 1.0, %v416_v63 }
 0x107   :  { %v476_v57 = vor.u32 1.1754944e-38, %v475_v52 }
 0x108   :  { %v404_v0 = vadd.f32 %v714_v51, %v403_v59  ;;  %v460_v9 = vrot.slane %v459_v3, 2  ;;  %v418_v10 = vmul.f32 %v718_v58, %v417_v5 }
 0x109   :  { %v720_v33 = vpop.eup %719 }
 0x10a   :  { %v408_v6 = vsel %vm407_vm4, %v714_v51, %v404_v0  ;;  %v461_v13 = vadd.f32 %v460_v9, %v459_v3  ;;  %v419_v15 = vadd.f32 %v718_v58, %v418_v10  ;;  %v465_v34 = vmul.f32 %v720_v33, %v456_v12 }
 0x10b   :  { %v413_v11 = vsel %vm410_vm5, %v412_v7, %v408_v6  ;;  %vm470_vm12 = vweird.f32 %v720_v33 }
 0x10c   :  { %v414_v14 = vmul.f32 %v1356_v16, %v413_v11  ;;  %v462_v21 = vrot.slane %v461_v13, 1  ;;  %v423_v23 = vsel %vm422_vm8, %v718_v58, %v419_v15  ;;  %v466_v38 = vsub.f32 1.0, %v465_v34  ;;  %vm471_vm14 = vmor %vm469_vm13, %vm470_vm12 }
 0x10d   :  { %v428_v27 = vsel %vm425_vm10, %v427_v26, %v423_v23 }
 0x10e   :  { %v463_v16 = vadd.f32 %v462_v21, %v461_v13  ;;  %v429_v30 = vmul.f32 %v1362_v28, %v428_v27  ;;  %v467_v43 = vmul.f32 %v720_v33, %v466_v38 }
 0x110   :  { %721 = vrcp.f32 %v463_v16  ;;  %v468_v47 = vadd.f32 %v720_v33, %v467_v43  ;;  %v490_v59 = vand.u32 2147483648, %v463_v16  ;;  %vm484_vm1 = vweird.f32 %v463_v16 }
 0x111   :  { %v488_v62 = vand.u32 2147483647, %v463_v16 }
 0x112   :  { %v472_v54 = vsel %vm471_vm14, %v720_v33, %v468_v47  ;;  %v491_v4 = vor.u32 1.1754944e-38, %v490_v59 }
 0x113   :  { %v477_v17 = vsel %vm474_vm15, %v476_v57, %v472_v54  ;;  %vm489_vm3 = vcmp.eq.f32.partialorder %v488_v62, 8.507059e+37 }
 0x114   :  { %v478_v60 = vmul.f32 %v1368_v50, %v477_v17 }
 0x116   :  { %v722_v39 = vpop.eup %721 }
 0x117   :  { %v480_v44 = vmul.f32 %v722_v39, %v463_v16  ;;  %vm485_vm0 = vweird.f32 %v722_v39 }
 0x118   :  { %vm486_vm2 = vmor %vm484_vm1, %vm485_vm0 }
 0x119   :  { %v481_v48 = vsub.f32 1.0, %v480_v44 }
 0x11b   :  { %v482_v56 = vmul.f32 %v722_v39, %v481_v48 }
 0x11d   :  { %v483_v58 = vadd.f32 %v722_v39, %v482_v56 }
 0x11f   :  { %v487_v2 = vsel %vm486_vm2, %v722_v39, %v483_v58 }
 0x120   :  { %v492_v9 = vsel %vm489_vm3, %v491_v4, %v487_v2 }
 0x121   :  { %v493_v11 = vmul.f32 %v1372_v55, %v492_v9 }
 0x13a   :  { %v519_v24 = vpop.permute.xlu0 %518 }
 0x13b   :  { %v1377_v19 = vmul.f32 %v519_v24, %v414_v14 }
 0x13d   :  { %v581_v22 = vsel %vm365_vm9, %v1377_v19, 0.0 }
 0x13e   :  { %v582_v25 = vrot.slane %v581_v22, 4 }
 0x140   :  { %v583_v29 = vadd.f32 %v582_v25, %v581_v22 }
 0x141   :  { %v539_v63 = vpop.permute.xlu2 %538 }
 0x142   :  { %v584_v35 = vrot.slane %v583_v29, 2  ;;  %v544_v5 = vmul.f32 %v539_v63, %v1377_v19 }
 0x144   :  { %v521_v31 = vpop.permute.xlu0 %520  ;;  %v585_v40 = vadd.f32 %v584_v35, %v583_v29 }
 0x145   :  { %v1382_v32 = vmul.f32 %v521_v31, %v429_v30 }
 0x146   :  { %v586_v45 = vrot.slane %v585_v40, 1 }
 0x147   :  { %v588_v36 = vsel %vm365_vm9, %v1382_v32, 0.0 }
 0x148   :  { %v589_v37 = vrot.slane %v588_v36, 4  ;;  %v587_v49 = vadd.f32 %v586_v45, %v585_v40 }
 0x149   :  { %v541_v20 = vpop.permute.xlu2 %540 }
 0x14a   :  { %v590_v41 = vadd.f32 %v589_v37, %v588_v36  ;;  %v545_v55 = vmul.f32 %v541_v20, %v1382_v32 }
 0x14c   :  { %v591_v42 = vrot.slane %v590_v41, 2 }
 0x14e   :  { %v592_v46 = vadd.f32 %v591_v42, %v590_v41 }
 0x150   :  { %v593_v28 = vrot.slane %v592_v46, 1 }
 0x152   :  { %v594_v51 = vadd.f32 %v593_v28, %v592_v46 }
 0x154   :  { %v597_v53 = vsel %vm574_vm11, %v594_v51, %v587_v49 }
 0x155   :  { %598 = vrot.lane.b32.xlu0 %v597_v53, %s776_s3 }
 0x159   :  { %v549_v3 = vpop.permute.xlu0 %548 }
 0x15c   :  { %v529_v0 = vpop.permute.xlu1 %528 }
 0x15d   :  { %v534_v1 = vmul.f32 %v529_v0, %v478_v60  ;;  %628 = vst.msk [vmem:[#allocation4] sm:$0xff] %vm365_vm9, %v529_v0 }
 0x15f   :  { %v554_v6 = vmul.f32 %v549_v3, %v534_v1  ;;  %v603_v7 = vsel %vm365_vm9, %v534_v1, 0.0 }
 0x160   :  { %v604_v8 = vrot.slane %v603_v7, 4 }
 0x161   :  { %v556_v50 = vadd.f32 %v554_v6, %v544_v5 }
 0x162   :  { %v605_v10 = vadd.f32 %v604_v8, %v603_v7 }
 0x163   :  { %v558_v13 = vsel %vm365_vm9, %v556_v50, 0.0 }
 0x164   :  { %v531_v12 = vpop.permute.xlu1 %530  ;;  %v606_v15 = vrot.slane %v605_v10, 2  ;;  %v559_v18 = vrot.slane %v558_v13, 4 }
 0x165   :  { %v535_v14 = vmul.f32 %v531_v12, %v493_v11  ;;  %629 = vst.msk [vmem:[#allocation4 + $0x8] sm:$0xff] %vm365_vm9, %v531_v12 }
 0x166   :  { %v607_v21 = vadd.f32 %v606_v15, %v605_v10  ;;  %v560_v23 = vadd.f32 %v559_v18, %v558_v13  ;;  %655 = dma.vmem_to_hbm [thread:$0]  %s648_s2, 256, %s650_s6, [#allocation5], %s778_s7, %s778_s7, %s779_s8  }
 0x167   :  { %v610_v24 = vsel %vm365_vm9, %v535_v14, 0.0 }
 0x168   :  { %v611_v19 = vrot.slane %v610_v24, 4  ;;  %v608_v33 = vrot.slane %v607_v21, 1  ;;  %v561_v31 = vrot.slane %v560_v23, 2 }
 0x16a   :  { %v612_v22 = vadd.f32 %v611_v19, %v610_v24  ;;  %v609_v36 = vadd.f32 %v608_v33, %v607_v21  ;;  %v562_v32 = vadd.f32 %v561_v31, %v560_v23 }
 0x16c   :  { %v613_v25 = vrot.slane %v612_v22, 2  ;;  %v551_v26 = vpop.permute.xlu1 %550  ;;  %v563_v42 = vrot.slane %v562_v32, 1 }
 0x16d   :  { %v555_v27 = vmul.f32 %v551_v26, %v535_v14 }
 0x16e   :  { %v614_v16 = vadd.f32 %v613_v25, %v612_v22  ;;  %v564_v44 = vadd.f32 %v563_v42, %v562_v32 }
 0x16f   :  { %v557_v29 = vadd.f32 %v555_v27, %v545_v55 }
 0x170   :  { %v615_v30 = vrot.slane %v614_v16, 1 }
 0x171   :  { %v565_v34 = vsel %vm365_vm9, %v557_v29, 0.0  ;;  %vm579_vm9 = vcmask 197632  }
 0x172   :  { %v566_v35 = vrot.slane %v565_v34, 4  ;;  %v616_v37 = vadd.f32 %v615_v30, %v614_v16 }
 0x174   :  { %v567_v38 = vadd.f32 %v566_v35, %v565_v34  ;;  %v619_v39 = vsel %vm574_vm11, %v616_v37, %v609_v36 }
 0x175   :  { %620 = vrot.lane.b32.xlu1 %v619_v39, %s776_s3 }
 0x176   :  { %v568_v40 = vrot.slane %v567_v38, 2 }
 0x178   :  { %v569_v41 = vadd.f32 %v568_v40, %v567_v38 }
 0x17a   :  { %v570_v43 = vrot.slane %v569_v41, 1 }
 0x17c   :  { %v571_v45 = vadd.f32 %v570_v43, %v569_v41 }
 0x17e   :  { %v575_v46 = vsel %vm574_vm11, %v571_v45, %v564_v44 }
 0x17f   :  { %576 = vrot.lane.b32.xlu2 %v575_v46, %s776_s3 }
 0x1c7   :  { %v599_v28 = vpop.permute.xlu0 %598 }
 0x1c8   :  { %602 = vst.msk [vmem:[#allocation2 + $0x2] sm:$0x3] %vm579_vm9, %v599_v28 }
 0x1d9   :  { %v577_v47 = vpop.permute.xlu2 %576 }
 0x1da   :  { %580 = vst.msk [vmem:[#allocation2] sm:$0x3] %vm579_vm9, %v577_v47 }
 0x1e7   :  { %v621_v48 = vpop.permute.xlu1 %620 }
 0x1e8   :  { %624 = vst.msk [vmem:[#allocation2 + $0x4] sm:$0x3] %vm579_vm9, %v621_v48 }
 0x1e9   :  { %642 = dma.vmem_to_hbm [thread:$0]  %s635_s9, 96, %s637_s11, [#allocation3], %s781_s12, %s781_s12, %s782_s13  }
 0x1ea   :  { %771 = dma.done.wait [#allocation3], 96  }
 0x1eb   :  { %772 = vsyncadd [#allocation3], 4294967200 }
 0x1ec   :  { %773 = dma.done.wait [#allocation5], 256  }
 0x1ed   :  { %774 = vsyncadd [#allocation5], 4294967040 }
 0x1ee   :  { %664 = vsyncpa [#allocation3], 1 }
 0x1ef   :  { %665 = vsyncpa [#allocation5], 1 }

</bundles_post_ra>
